<compile_context>
chip_gen: v5e
topology: v5e:2x2
jax: 0.10.0
libtpu: 0.0.40
codegen_flags: <defaults>
</compile_context>

<pallas_src>
import jax
import jax.numpy as jnp
from jax.experimental import pallas as pl
from jax.experimental.pallas import tpu as pltpu


_H1, _H2 = 512, 256          # hidden sizes from the PyTorch module
_MAX_TB = 1024               # batch-tile upper bound (multiple of 8)
_TILE_VMEM_BUDGET = 16 << 20  # budget for per-tile buffers (conservative for v7x)


def _round_up(v, m):
    return (v + m - 1) // m * m


def _cdiv(a, b):
    return (a + b - 1) // b


def _discriminator_kernel(x_ref, w1_ref, b1_ref, w2_ref, b2_ref, w3_ref, b3_ref,
                          out_ref):
    """Fused 3-layer MLP.  MXU operands bf16, all accumulation / VPU math f32."""
    # x arrives f32 straight from HBM; cast to bf16 only at the MXU input.
    x = x_ref[...].astype(jnp.bfloat16)                                  # (TB, D)

    # Layer 1: (TB, D) @ (D, 512) -> f32; bias + LeakyReLU(0.2) on the VPU.
    h1 = jnp.dot(x, w1_ref[...], preferred_element_type=jnp.float32)
    h1 = h1 + b1_ref[...]
    h1 = jnp.maximum(h1, 0.2 * h1)

    # Layer 2: (TB, 512) @ (512, 256) -> f32.
    h2 = jnp.dot(h1.astype(jnp.bfloat16), w2_ref[...],
                 preferred_element_type=jnp.float32)
    h2 = h2 + b2_ref[...]
    h2 = jnp.maximum(h2, 0.2 * h2)

    # Layer 3: (TB,256)@(256,1) would be 127/128 zero padding on the MXU, so do
    # it on the VPU/XLU instead (both have slack):
    #   broadcast multiply -> fold 256 lanes to 128 -> aligned XLU transpose
    #   -> sublane reduce -> lane-dense (1, TB) row.
    prod = h2 * w3_ref[...]                                              # (TB, 256)
    folded = prod[:, :128] + prod[:, 128:]                               # (TB, 128)
    t = jnp.transpose(folded)                                            # (128, TB)
    out_row = jnp.sum(t, axis=0, keepdims=True) + b3_ref[...]            # (1, TB)
    out_ref[...] = out_row.reshape(out_ref.shape).astype(out_ref.dtype)


def prepare_params(params):
    """One-time weight preprocessing, hoisted out of the per-call path."""
    w1, b1, w2, b2, w3, b3 = params
    return (
        w1.astype(jnp.bfloat16),                    # (D, 512)  MXU operand
        b1.reshape(1, _H1).astype(jnp.float32),
        w2.astype(jnp.bfloat16),                    # (512, 256) MXU operand
        b2.reshape(1, _H2).astype(jnp.float32),
        w3.reshape(1, _H2).astype(jnp.float32),     # row vector, stays f32 (VPU layer 3)
        b3.reshape(1, 1).astype(jnp.float32),
    )


def _choose_batch_tiling(n, d):
    """Pick (tile, num_tiles): big tiles to amortize grid-step overhead, >=2
    tiles when there is enough work (v7x megacore), VMEM-capped tile size,
    padding waste bounded to <= 8 rows per tile."""
    n8 = _round_up(n, 8)
    # Per-row VMEM footprint: x (f32, double-buffered) + bf16 copy + hidden
    # activations (f32 + bf16) + output row (double-buffered).
    bytes_per_row = d * (2 * 4 + 2) + (_H1 + _H2) * (4 + 2) + 16
    tb_cap = max(8, (_TILE_VMEM_BUDGET // bytes_per_row) // 8 * 8)
    max_tb = min(_MAX_TB, tb_cap)
    if n8 <= 8:
        return n8, 1
    num_tiles = max(2, _cdiv(n8, max_tb))
    tb = _round_up(_cdiv(n8, num_tiles), 8)
    return tb, num_tiles


def discriminator_forward(img, prepared_params):
    """img: (N, C, img_size, 1) float32.  Returns validity (N, 1) float32."""
    w1, b1, w2, b2, w3, b3 = prepared_params
    n = img.shape[0]
    x = img.reshape(n, -1).astype(jnp.float32)            # == img.view(N, -1)
    d = x.shape[1]
    assert w1.shape[0] == d, "flattened image dim does not match w1"

    tb, num_tiles = _choose_batch_tiling(n, d)
    n_pad = tb * num_tiles
    if n_pad != n:
        x = jnp.zeros((n_pad, d), jnp.float32).at[:n].set(x)

    # Explicit VMEM budget (guards v7x's smaller physical VMEM).
    weight_vmem = d * _H1 * 2 + _H1 * _H2 * 2 + (_H1 + 2 * _H2 + 1) * 4
    tile_vmem = tb * (d * (2 * 4 + 2) + (_H1 + _H2) * (4 + 2) + 16)
    vmem_limit = int(min(max(2 * (weight_vmem + tile_vmem), 32 << 20), 48 << 20))
    # TODO(synk): if D ever grows large enough that resident bf16 w1 alone
    # approaches the VMEM limit, add a K grid axis marked "arbitrary" with an
    # f32 accumulator instead of keeping all of w1 resident.

    flops = 2 * n_pad * (d * _H1 + _H1 * _H2 + _H2)
    bytes_accessed = (n_pad * d * 4                       # x (f32, unpadded in D)
                      + d * _H1 * 2 + _H1 * _H2 * 2       # bf16 weights
                      + (_H1 + 2 * _H2 + 1) * 4           # f32 biases + w3 row
                      + n_pad * 4)                        # lane-dense f32 output

    out = pl.pallas_call(
        _discriminator_kernel,
        out_shape=jax.ShapeDtypeStruct((num_tiles, 1, tb), jnp.float32),
        grid_spec=pl.GridSpec(
            grid=(num_tiles,),
            in_specs=[
                pl.BlockSpec((tb, d), lambda i: (i, 0)),      # x tile (f32)
                pl.BlockSpec((d, _H1), lambda i: (0, 0)),     # w1 (resident)
                pl.BlockSpec((1, _H1), lambda i: (0, 0)),     # b1 (resident)
                pl.BlockSpec((_H1, _H2), lambda i: (0, 0)),   # w2 (resident)
                pl.BlockSpec((1, _H2), lambda i: (0, 0)),     # b2 (resident)
                pl.BlockSpec((1, _H2), lambda i: (0, 0)),     # w3 row (resident)
                pl.BlockSpec((1, 1), lambda i: (0, 0)),       # b3 (resident)
            ],
            out_specs=pl.BlockSpec((1, 1, tb), lambda i: (i, 0, 0)),
        ),
        compiler_params=pltpu.CompilerParams(
            dimension_semantics=("parallel",),
            vmem_limit_bytes=vmem_limit,
        ),
        cost_estimate=pl.CostEstimate(
            flops=int(flops), transcendentals=0, bytes_accessed=int(bytes_accessed)),
    )(x, w1, b1, w2, b2, w3, b3)

    return out.reshape(n_pad, 1)[:n]


def init_params(key, in_dim):
    """Deterministic init mimicking PyTorch nn.Linear defaults:
    U(-1/sqrt(fan_in), 1/sqrt(fan_in)) for both weight and bias."""
    dims = [(in_dim, _H1), (_H1, _H2), (_H2, 1)]
    params = []
    for fan_in, fan_out in dims:
        kw, kb, key = jax.random.split(key, 3)
        bound = 1.0 / (fan_in ** 0.5)
        # store weights as (in, out) so the kernel does x @ w directly
        w = jax.random.uniform(kw, (fan_in, fan_out), jnp.float32, -bound, bound)
        b = jax.random.uniform(kb, (1, fan_out), jnp.float32, -bound, bound)
        params += [w, b]
    return params


def reference_forward(img, params):
    """Pure-JAX f32 reference for correctness check."""
    w1, b1, w2, b2, w3, b3 = params
    x = img.reshape(img.shape[0], -1)
    h = x @ w1 + b1
    h = jnp.where(h > 0, h, 0.2 * h)
    h = h @ w2 + b2
    h = jnp.where(h > 0, h, 0.2 * h)
    return h @ w3 + b3


if __name__ == "__main__":
    # Small shapes consistent with img_shape = (channels, img_size, 1)
    batch, channels, img_size = 8, 1, 32
    in_dim = channels * img_size * 1

    key = jax.random.PRNGKey(0)
    k_img, k_params = jax.random.split(key)
    img = jax.random.normal(k_img, (batch, channels, img_size, 1), jnp.float32)
    params = init_params(k_params, in_dim)

    prepared = prepare_params(params)              # one-time weight prep (hoisted)
    validity = discriminator_forward(img, prepared)
    validity = jax.block_until_ready(validity)

    ref = reference_forward(img, params)
    assert validity.shape == (batch, 1)
    # bf16 MXU operands -> loosened tolerance vs the f32 reference.
    assert jnp.allclose(validity, ref, atol=5e-2, rtol=5e-2), "mismatch vs reference"

    print("KERNEL_OK")
</pallas_src>

<mosaic_0001>
module attributes {stable_mosaic.version = 11 : i64} {
  func.func @_discriminator_kernel(%arg0: i32, %arg1: memref<8x32xf32, #tpu.memory_space<vmem>>, %arg2: memref<32x512xbf16, #tpu.memory_space<vmem>>, %arg3: memref<1x512xf32, #tpu.memory_space<vmem>>, %arg4: memref<512x256xbf16, #tpu.memory_space<vmem>>, %arg5: memref<1x256xf32, #tpu.memory_space<vmem>>, %arg6: memref<1x256xf32, #tpu.memory_space<vmem>>, %arg7: memref<1x1xf32, #tpu.memory_space<vmem>>, %arg8: memref<1x1x8xf32, #tpu.memory_space<vmem>>) attributes {dimension_semantics = [#tpu.dimension_semantics<parallel>], iteration_bounds = array<i64: 1>, scalar_prefetch = 0 : i64, scratch_operands = 0 : i64, tpu.core_type = #tpu.core_type<tc>, window_params = [{transform_indices = @transform_0, window_bounds = array<i64: 8, 32>}, {pipeline_mode = #tpu.pipeline_mode<synchronous>, transform_indices = @transform_1, window_bounds = array<i64: 32, 512>}, {pipeline_mode = #tpu.pipeline_mode<synchronous>, transform_indices = @transform_2, window_bounds = array<i64: 1, 512>}, {pipeline_mode = #tpu.pipeline_mode<synchronous>, transform_indices = @transform_3, window_bounds = array<i64: 512, 256>}, {pipeline_mode = #tpu.pipeline_mode<synchronous>, transform_indices = @transform_4, window_bounds = array<i64: 1, 256>}, {pipeline_mode = #tpu.pipeline_mode<synchronous>, transform_indices = @transform_5, window_bounds = array<i64: 1, 256>}, {pipeline_mode = #tpu.pipeline_mode<synchronous>, transform_indices = @transform_6, window_bounds = array<i64: 1, 1>}, {transform_indices = @transform_7, window_bounds = array<i64: 1, 1, 8>}]} {
    %c0 = arith.constant 0 : index
    %c0_0 = arith.constant 0 : index
    %0 = vector.load %arg1[%c0, %c0_0] : memref<8x32xf32, #tpu.memory_space<vmem>>, vector<8x32xf32>
    %1 = arith.truncf %0 : vector<8x32xf32> to vector<8x32xbf16>
    %c0_1 = arith.constant 0 : index
    %c0_2 = arith.constant 0 : index
    %2 = vector.load %arg2[%c0_1, %c0_2] : memref<32x512xbf16, #tpu.memory_space<vmem>>, vector<32x512xbf16>
    %cst = arith.constant dense<0.000000e+00> : vector<8x512xf32>
    %3 = tpu.matmul %1, %2, %cst {dimension_numbers = #tpu.dot_dimension_numbers<[1], [0], [0], [1], [0, 0, 1, 1], [], []>} : vector<8x32xbf16>, vector<32x512xbf16>, vector<8x512xf32> -> vector<8x512xf32>
    %c0_3 = arith.constant 0 : index
    %c0_4 = arith.constant 0 : index
    %4 = vector.load %arg3[%c0_3, %c0_4] : memref<1x512xf32, #tpu.memory_space<vmem>>, vector<1x512xf32>
    %5 = vector.broadcast %4 : vector<1x512xf32> to vector<8x512xf32>
    %6 = arith.addf %3, %5 : vector<8x512xf32>
    %cst_5 = arith.constant 2.000000e-01 : f32
    %7 = vector.broadcast %cst_5 : f32 to vector<8x512xf32>
    %8 = arith.mulf %7, %6 : vector<8x512xf32>
    %9 = arith.maximumf %6, %8 : vector<8x512xf32>
    %10 = arith.truncf %9 : vector<8x512xf32> to vector<8x512xbf16>
    %c0_6 = arith.constant 0 : index
    %c0_7 = arith.constant 0 : index
    %11 = vector.load %arg4[%c0_6, %c0_7] : memref<512x256xbf16, #tpu.memory_space<vmem>>, vector<512x256xbf16>
    %cst_8 = arith.constant dense<0.000000e+00> : vector<8x256xf32>
    %12 = tpu.matmul %10, %11, %cst_8 {dimension_numbers = #tpu.dot_dimension_numbers<[1], [0], [0], [1], [0, 0, 1, 1], [], []>} : vector<8x512xbf16>, vector<512x256xbf16>, vector<8x256xf32> -> vector<8x256xf32>
    %c0_9 = arith.constant 0 : index
    %c0_10 = arith.constant 0 : index
    %13 = vector.load %arg5[%c0_9, %c0_10] : memref<1x256xf32, #tpu.memory_space<vmem>>, vector<1x256xf32>
    %14 = vector.broadcast %13 : vector<1x256xf32> to vector<8x256xf32>
    %15 = arith.addf %12, %14 : vector<8x256xf32>
    %cst_11 = arith.constant 2.000000e-01 : f32
    %16 = vector.broadcast %cst_11 : f32 to vector<8x256xf32>
    %17 = arith.mulf %16, %15 : vector<8x256xf32>
    %18 = arith.maximumf %15, %17 : vector<8x256xf32>
    %c0_12 = arith.constant 0 : index
    %c0_13 = arith.constant 0 : index
    %19 = vector.load %arg6[%c0_12, %c0_13] : memref<1x256xf32, #tpu.memory_space<vmem>>, vector<1x256xf32>
    %20 = vector.broadcast %19 : vector<1x256xf32> to vector<8x256xf32>
    %21 = arith.mulf %18, %20 : vector<8x256xf32>
    %22 = vector.extract_strided_slice %21 {offsets = [0, 0], sizes = [8, 128], strides = [1, 1]} : vector<8x256xf32> to vector<8x128xf32>
    %23 = vector.extract_strided_slice %21 {offsets = [0, 128], sizes = [8, 128], strides = [1, 1]} : vector<8x256xf32> to vector<8x128xf32>
    %24 = arith.addf %22, %23 : vector<8x128xf32>
    %25 = tpu.transpose %24, [1, 0] : vector<8x128xf32> -> vector<128x8xf32>
    %cst_14 = arith.constant dense<0.000000e+00> : vector<8xf32>
    %26 = vector.multi_reduction <add>, %25, %cst_14 [0] : vector<128x8xf32> to vector<8xf32>
    %27 = vector.shape_cast %26 : vector<8xf32> to vector<1x8xf32>
    %c0_15 = arith.constant 0 : index
    %c0_16 = arith.constant 0 : index
    %28 = vector.load %arg7[%c0_15, %c0_16] : memref<1x1xf32, #tpu.memory_space<vmem>>, vector<1x1xf32>
    %29 = vector.broadcast %28 : vector<1x1xf32> to vector<1x8xf32>
    %30 = arith.addf %27, %29 : vector<1x8xf32>
    %31 = vector.shape_cast %30 : vector<1x8xf32> to vector<1x1x8xf32>
    %c0_17 = arith.constant 0 : index
    %c0_18 = arith.constant 0 : index
    %c0_19 = arith.constant 0 : index
    %32 = vector.load %arg8[%c0_17, %c0_18, %c0_19] : memref<1x1x8xf32, #tpu.memory_space<vmem>>, vector<1x1x8xf32>
    tpu.vector_store %arg8[%c0_17, %c0_18, %c0_19], %31 {strides = array<i32>} : memref<1x1x8xf32, #tpu.memory_space<vmem>>, vector<1x1x8xf32>,
    return
  }
  func.func @transform_0(%arg0: i32) -> (i32, i32) {
    %c0_i32 = arith.constant 0 : i32
    %c0_i32_0 = arith.constant 0 : i32
    return %arg0, %c0_i32 : i32, i32
  }
  func.func @transform_1(%arg0: i32) -> (i32, i32) {
    %c0_i32 = arith.constant 0 : i32
    %c0_i32_0 = arith.constant 0 : i32
    %c0_i32_1 = arith.constant 0 : i32
    return %c0_i32, %c0_i32_0 : i32, i32
  }
  func.func @transform_2(%arg0: i32) -> (i32, i32) {
    %c0_i32 = arith.constant 0 : i32
    %c0_i32_0 = arith.constant 0 : i32
    %c0_i32_1 = arith.constant 0 : i32
    return %c0_i32, %c0_i32_0 : i32, i32
  }
  func.func @transform_3(%arg0: i32) -> (i32, i32) {
    %c0_i32 = arith.constant 0 : i32
    %c0_i32_0 = arith.constant 0 : i32
    %c0_i32_1 = arith.constant 0 : i32
    return %c0_i32, %c0_i32_0 : i32, i32
  }
  func.func @transform_4(%arg0: i32) -> (i32, i32) {
    %c0_i32 = arith.constant 0 : i32
    %c0_i32_0 = arith.constant 0 : i32
    %c0_i32_1 = arith.constant 0 : i32
    return %c0_i32, %c0_i32_0 : i32, i32
  }
  func.func @transform_5(%arg0: i32) -> (i32, i32) {
    %c0_i32 = arith.constant 0 : i32
    %c0_i32_0 = arith.constant 0 : i32
    %c0_i32_1 = arith.constant 0 : i32
    return %c0_i32, %c0_i32_0 : i32, i32
  }
  func.func @transform_6(%arg0: i32) -> (i32, i32) {
    %c0_i32 = arith.constant 0 : i32
    %c0_i32_0 = arith.constant 0 : i32
    %c0_i32_1 = arith.constant 0 : i32
    return %c0_i32, %c0_i32_0 : i32, i32
  }
  func.func @transform_7(%arg0: i32) -> (i32, i32, i32) {
    %c0_i32 = arith.constant 0 : i32
    %c0_i32_0 = arith.constant 0 : i32
    %c0_i32_1 = arith.constant 0 : i32
    return %arg0, %c0_i32, %c0_i32_0 : i32, i32, i32
  }
}

</mosaic_0001>

<bundles_post_ra>
// kernel: tpu_custom_call.1
= control target key start
LH: loop header
LB: loop body
LE: loop exit
PB: predicated region body
PF: predicated region fallthrough
CT: control target
= control target key end

     0   :  { %s1421_s0 = inlined_call_operand.hbm [shape: f32[8,32], index: 0, kind: input, shape index: {}]   ;;  %s1422_s1 = inlined_call_operand.hbm [shape: bf16[32,512], index: 1, kind: input, shape index: {}]   ;;  %s1423_s2 = inlined_call_operand.hbm [shape: f32[1,512], index: 2, kind: input, shape index: {}]   ;;  %s1424_s3 = inlined_call_operand.hbm [shape: bf16[512,256], index: 3, kind: input, shape index: {}]   ;;  %s1425_s4 = inlined_call_operand.vmem [shape: f32[1,256], index: 4, kind: input, shape index: {}]   ;;  %s1426_s5 = inlined_call_operand.vmem [shape: f32[1,256], index: 5, kind: input, shape index: {}]   ;;  %s1427_s6 = inlined_call_operand.<no memory space> [shape: f32[1,1], index: 6, kind: input, shape index: {}]   ;;  %s1428_s7 = inlined_call_operand.hbm [shape: f32[1,1,8], index: 7, kind: output, shape index: {}]  }
   0x1   :  { %v12_v0 = vstv %s1427_s6 }
   0x2   :  { %13 = vst [vmem:[#allocation2] sm:$0x1] %v12_v0 }
   0x3   :  { %14 = vsyncpa [#allocation4], 0 }
   0x4   :  { %15 = vsyncpa [#allocation7], 0 }
   0x5   :  { %16 = vsyncpa [#allocation10], 0  ;;  %s33_s28 = sshll.u32 %s1422_s1, 4  ;;  %s34_s28 = int_to_ptr.hbm [resolvable:$true] %s33_s28 }
   0x6   :  { %17 = vsyncpa [#allocation5], 0  ;;  %s1327_s29 = smov [#allocation6]   ;;  %s23_s10 = sshll.u32 %s1421_s0, 4  ;;  %s24_s10 = int_to_ptr.hbm [resolvable:$true] %s23_s10 }
   0x7   :  { %s35_s30 = sshll.u32 %s1327_s29, 4  ;;  %s1328_s11 = smov 256   ;;  %s36_s30 = int_to_ptr.vmem [resolvable:$true] %s35_s30 }
   0x8   :  { %s1329_s12 = smov 16   ;;  %s1330_s6 = smov [#allocation3]  }
   0x9   :  { %41 = dma.hbm_to_vmem [thread:$0]  %s34_s28, 1024, %s36_s30, [#allocation7], %s1328_s11, %s1328_s11, %s1329_s12  }
   0xa   :  { %s25_s13 = sshll.u32 %s1330_s6, 4  ;;  %s47_s16 = sshll.u32 %s1423_s2, 4  ;;  %s26_s13 = int_to_ptr.vmem [resolvable:$true] %s25_s13  ;;  %s48_s16 = int_to_ptr.hbm [resolvable:$true] %s47_s16 }
   0xb   :  { %28 = dma.hbm_to_vmem [thread:$0]  %s24_s10, 128, %s26_s13, [#allocation4]  }
   0xc   :  { %s57_s18 = sshll.u32 %s1424_s3, 4  ;;  %s1331_s19 = smov [#allocation8]   ;;  %s58_s18 = int_to_ptr.hbm [resolvable:$true] %s57_s18 }
   0xd   :  { %s49_s20 = sshll.u32 %s1331_s19, 4  ;;  %s1332_s0 = smov [#allocation9]   ;;  %s50_s20 = int_to_ptr.vmem [resolvable:$true] %s49_s20 }
   0xe   :  { %52 = dma.hbm_to_vmem [thread:$0]  %s48_s16, 64, %s50_s20, [#allocation7]  }
   0xf   :  { %s59_s21 = sshll.u32 %s1332_s0, 4  ;;  %s1333_s22 = smov 128   ;;  %s60_s21 = int_to_ptr.vmem [resolvable:$true] %s59_s21 }
  0x10   :  { %s1334_s23 = smov 8  }
  0x11   :  { %65 = dma.hbm_to_vmem [thread:$0]  %s58_s18, 8192, %s60_s21, [#allocation10], %s1333_s22, %s1333_s22, %s1334_s23  }
  0x12   :  { %1319 = dma.done.wait [#allocation4], 128  }
  0x13   :  { %1320 = vsyncadd [#allocation4], 4294967168 }
  0x14   :  { %1321 = dma.done.wait [#allocation7], 1088  }
  0x15   :  { %1322 = vsyncadd [#allocation7], 4294966208 }
  0x16   :  { %1323 = dma.done.wait [#allocation10], 8192  }
  0x17   :  { %1324 = vsyncadd [#allocation10], 4294959104  ;;  %v841_v1 = vld [vmem:[#allocation6 + $0x20] sm:$0xf]  ;;  %v1121_v2 = vld [vmem:[#allocation6 + $0x2c] sm:$0xf0] }
  0x18   :  { %v1119_v3 = vld [vmem:[#allocation6 + $0x24] sm:$0xf]  ;;  %v842_v4 = vor.u32 %v1121_v2, %v841_v1  ;;  %v843_v5 = vld [vmem:[#allocation6 + $0x30] sm:$0xf0]  ;;  %v849_v6 = vld [vmem:[#allocation6 + $0x28] sm:$0xf] }
  0x19   :  { %v1122_v7 = vld [vmem:[#allocation6 + $0x34] sm:$0xf0]  ;;  %v846_v8 = vor.u32 %v1119_v3, %v843_v5  ;;  %v1120_v10 = vld [vmem:[#allocation6 + $0x2c] sm:$0xf]  ;;  %v851_v11 = vld [vmem:[#allocation6 + $0x38] sm:$0xf0] }
  0x1a   :  { %v850_v9 = vor.u32 %v1122_v7, %v849_v6  ;;  %v825_v12 = vld [vmem:[#allocation6] sm:$0xf]  ;;  %159 = vmatpush.bf16.msra.mxu0 %v842_v4  ;;  %v854_v13 = vor.u32 %v1120_v10, %v851_v11  ;;  %v1117_v14 = vld [vmem:[#allocation6 + $0xc] sm:$0xf0]  ;;  %v1115_v15 = vld [vmem:[#allocation6 + $0x4] sm:$0xf] }
  0x1b   :  { %v827_v16 = vld [vmem:[#allocation6 + $0x10] sm:$0xf0]  ;;  %172 = vmatpush.bf16.msra.mxu1 %v846_v8  ;;  %v826_v17 = vor.u32 %v1117_v14, %v825_v12  ;;  %v833_v19 = vld [vmem:[#allocation6 + $0x8] sm:$0xf]  ;;  %v1118_v20 = vld [vmem:[#allocation6 + $0x14] sm:$0xf0] }
  0x1c   :  { %185 = vmatpush.bf16.msra.mxu2 %v850_v9  ;;  %v830_v18 = vor.u32 %v1115_v15, %v827_v16  ;;  %v1116_v21 = vld [vmem:[#allocation6 + $0xc] sm:$0xf]  ;;  %198 = vmatpush.bf16.msra.mxu3 %v854_v13  ;;  %v834_v22 = vor.u32 %v1118_v20, %v833_v19  ;;  %v835_v23 = vld [vmem:[#allocation6 + $0x18] sm:$0xf0]  ;;  %vm149_vm0 = vcmask 261120   ;;  %vm756_vm1 = vcmask 64512  }
  0x1d   :  { %v89_v24 = vld [vmem:[#allocation3] sm:$0xff]  ;;  %v917_v25 = vld [vmem:[#allocation9 + $0x70] sm:$0xf]  ;;  %v838_v26 = vor.u32 %v1116_v21, %v835_v23  ;;  %v909_v33 = vld [vmem:[#allocation9 + $0x60] sm:$0xf]  ;;  %s811_s28 = sshll.u32 %s1428_s7, 4  ;;  %s812_s28 = int_to_ptr.hbm [resolvable:$true] %s811_s28 }
  0x1e   :  { %v90_v27 = vpack.c.bf16 %v89_v24, %v89_v24  ;;  %v1138_v28 = vld [vmem:[#allocation9 + $0x74] sm:$0xf0]  ;;  %v981_v29 = vld [vmem:[#allocation9 + $0xf0] sm:$0xf]  ;;  %160 = vmatpush.bf16.msra.mxu0 %v826_v17  ;;  %v1136_v34 = vld [vmem:[#allocation9 + $0x64] sm:$0xf0] }
  0x1f   :  { %v1154_v30 = vld [vmem:[#allocation9 + $0xf4] sm:$0xf0]  ;;  %v918_v31 = vor.u32 %v1138_v28, %v917_v25  ;;  %v973_v35 = vld [vmem:[#allocation9 + $0xe0] sm:$0xf]  ;;  %173 = vmatpush.bf16.msra.mxu1 %v830_v18  ;;  %v1152_v36 = vld [vmem:[#allocation9 + $0xe4] sm:$0xf0]  ;;  %v910_v39 = vor.u32 %v1136_v34, %v909_v33 }
  0x20   :  { %v982_v32 = vor.u32 %v1154_v30, %v981_v29  ;;  %186 = vmatpush.bf16.msra.mxu2 %v834_v22  ;;  %v1045_v37 = vld [vmem:[#allocation9 + $0x170] sm:$0xf]  ;;  %v1170_v38 = vld [vmem:[#allocation9 + $0x174] sm:$0xf0]  ;;  %199 = vmatpush.bf16.msra.mxu3 %v838_v26  ;;  %v974_v44 = vor.u32 %v1152_v36, %v973_v35  ;;  %v1037_v49 = vld [vmem:[#allocation9 + $0x160] sm:$0xf] }
  0x21   :  { %v1046_v40 = vor.u32 %v1170_v38, %v1045_v37  ;;  %v1109_v41 = vld [vmem:[#allocation9 + $0x1f0] sm:$0xf]  ;;  %v1186_v42 = vld [vmem:[#allocation9 + $0x1f4] sm:$0xf0]  ;;  %855 = vmatmul.msk.bf16.vlgmr.msra.gmra.mxu0 %vm149_vm0, %v90_v27  ;;  %v1168_v50 = vld [vmem:[#allocation9 + $0x164] sm:$0xf0] }
  0x22   :  { %607 = vmatpush.bf16.msrb.mxu0 %v918_v31  ;;  %v901_v43 = vld [vmem:[#allocation9 + $0x50] sm:$0xf]  ;;  %v1110_v45 = vor.u32 %v1186_v42, %v1109_v41  ;;  %v1134_v46 = vld [vmem:[#allocation9 + $0x54] sm:$0xf0]  ;;  %856 = vmatmul.msk.bf16.vlgmr.msra.gmra.mxu1 %vm149_vm0, %v90_v27  ;;  %v1101_v51 = vld [vmem:[#allocation9 + $0x1e0] sm:$0xf]  ;;  %v1038_v52 = vor.u32 %v1168_v50, %v1037_v49 }
  0x23   :  { %620 = vmatpush.bf16.msrb.mxu1 %v982_v32  ;;  %v965_v47 = vld [vmem:[#allocation9 + $0xd0] sm:$0xf]  ;;  %v1150_v48 = vld [vmem:[#allocation9 + $0xd4] sm:$0xf0]  ;;  %857 = vmatmul.msk.bf16.vlgmr.msra.gmra.mxu2 %vm149_vm0, %v90_v27  ;;  %v1184_v53 = vld [vmem:[#allocation9 + $0x1e4] sm:$0xf0]  ;;  %v902_v54 = vor.u32 %v1134_v46, %v901_v43 }
  0x24   :  { %858 = vmatmul.msk.bf16.vlgmr.msra.gmra.mxu3 %vm149_vm0, %v90_v27  ;;  %633 = vmatpush.bf16.msrb.mxu2 %v1046_v40  ;;  %v1102_v55 = vor.u32 %v1184_v53, %v1101_v51  ;;  %v893_v56 = vld [vmem:[#allocation9 + $0x40] sm:$0xf]  ;;  %v1132_v57 = vld [vmem:[#allocation9 + $0x44] sm:$0xf0]  ;;  %v1029_v58 = vld [vmem:[#allocation9 + $0x150] sm:$0xf]  ;;  %v966_v59 = vor.u32 %v1150_v48, %v965_v47 }
  0x25   :  { %646 = vmatpush.bf16.msrb.mxu3 %v1110_v45  ;;  %v1166_v60 = vld [vmem:[#allocation9 + $0x154] sm:$0xf0]  ;;  %v1093_v61 = vld [vmem:[#allocation9 + $0x1d0] sm:$0xf]  ;;  %v957_v63 = vld [vmem:[#allocation9 + $0xc0] sm:$0xf]  ;;  %v894_v2 = vor.u32 %v1132_v57, %v893_v56 }
  0x26   :  { %608 = vmatpush.bf16.msrb.mxu0 %v910_v39  ;;  %v1182_v62 = vld [vmem:[#allocation9 + $0x1d4] sm:$0xf0]  ;;  %v1148_v0 = vld [vmem:[#allocation9 + $0xc4] sm:$0xf0]  ;;  %v1030_v1 = vor.u32 %v1166_v60, %v1029_v58  ;;  %v885_v4 = vld [vmem:[#allocation9 + $0x30] sm:$0xf] }
  0x27   :  { %621 = vmatpush.bf16.msrb.mxu1 %v974_v44  ;;  %v1094_v3 = vor.u32 %v1182_v62, %v1093_v61  ;;  %v1021_v5 = vld [vmem:[#allocation9 + $0x140] sm:$0xf]  ;;  %v1164_v6 = vld [vmem:[#allocation9 + $0x144] sm:$0xf0]  ;;  %v958_v7 = vor.u32 %v1148_v0, %v957_v63  ;;  %v1130_v8 = vld [vmem:[#allocation9 + $0x34] sm:$0xf0] }
  0x28   :  { %634 = vmatpush.bf16.msrb.mxu2 %v1038_v52  ;;  %v1085_v9 = vld [vmem:[#allocation9 + $0x1c0] sm:$0xf]  ;;  %v1180_v10 = vld [vmem:[#allocation9 + $0x1c4] sm:$0xf0]  ;;  %v949_v11 = vld [vmem:[#allocation9 + $0xb0] sm:$0xf]  ;;  %v1022_v13 = vor.u32 %v1164_v6, %v1021_v5  ;;  %v886_v14 = vor.u32 %v1130_v8, %v885_v4 }
  0x29   :  { %647 = vmatpush.bf16.msrb.mxu3 %v1102_v55  ;;  %v1146_v12 = vld [vmem:[#allocation9 + $0xb4] sm:$0xf0]  ;;  %v1086_v15 = vor.u32 %v1180_v10, %v1085_v9  ;;  %v877_v16 = vld [vmem:[#allocation9 + $0x20] sm:$0xf]  ;;  %v1013_v17 = vld [vmem:[#allocation9 + $0x130] sm:$0xf] }
  0x2a   :  { %609 = vmatpush.bf16.msrb.mxu0 %v902_v54  ;;  %v1162_v18 = vld [vmem:[#allocation9 + $0x134] sm:$0xf0]  ;;  %v950_v19 = vor.u32 %v1146_v12, %v949_v11  ;;  %v1128_v20 = vld [vmem:[#allocation9 + $0x24] sm:$0xf0]  ;;  %v1077_v21 = vld [vmem:[#allocation9 + $0x1b0] sm:$0xf] }
  0x2b   :  { %622 = vmatpush.bf16.msrb.mxu1 %v966_v59  ;;  %v1178_v22 = vld [vmem:[#allocation9 + $0x1b4] sm:$0xf0]  ;;  %v941_v23 = vld [vmem:[#allocation9 + $0xa0] sm:$0xf]  ;;  %v1144_v24 = vld [vmem:[#allocation9 + $0xa4] sm:$0xf0]  ;;  %v1014_v25 = vor.u32 %v1162_v18, %v1013_v17  ;;  %v878_v26 = vor.u32 %v1128_v20, %v877_v16 }
  0x2c   :  { %635 = vmatpush.bf16.msrb.mxu2 %v1030_v1  ;;  %v1078_v27 = vor.u32 %v1178_v22, %v1077_v21  ;;  %v869_v28 = vld [vmem:[#allocation9 + $0x10] sm:$0xf]  ;;  %v1005_v29 = vld [vmem:[#allocation9 + $0x120] sm:$0xf]  ;;  %v1160_v30 = vld [vmem:[#allocation9 + $0x124] sm:$0xf0]  ;;  %v942_v31 = vor.u32 %v1144_v24, %v941_v23 }
  0x2d   :  { %648 = vmatpush.bf16.msrb.mxu3 %v1094_v3  ;;  %v1126_v32 = vld [vmem:[#allocation9 + $0x14] sm:$0xf0]  ;;  %v1069_v33 = vld [vmem:[#allocation9 + $0x1a0] sm:$0xf]  ;;  %v1176_v34 = vld [vmem:[#allocation9 + $0x1a4] sm:$0xf0]  ;;  %v1006_v37 = vor.u32 %v1160_v30, %v1005_v29 }
  0x2e   :  { %610 = vmatpush.bf16.msrb.mxu0 %v894_v2  ;;  %v933_v35 = vld [vmem:[#allocation9 + $0x90] sm:$0xf]  ;;  %v1142_v36 = vld [vmem:[#allocation9 + $0x94] sm:$0xf0]  ;;  %v861_v38 = vld [vmem:[#allocation9] sm:$0xf]  ;;  %v870_v39 = vor.u32 %v1126_v32, %v869_v28  ;;  %v1070_v40 = vor.u32 %v1176_v34, %v1069_v33 }
  0x2f   :  { %623 = vmatpush.bf16.msrb.mxu1 %v958_v7  ;;  %v1124_v41 = vld [vmem:[#allocation9 + $0x4] sm:$0xf0]  ;;  %v997_v42 = vld [vmem:[#allocation9 + $0x110] sm:$0xf]  ;;  %v1158_v43 = vld [vmem:[#allocation9 + $0x114] sm:$0xf0]  ;;  %v934_v44 = vor.u32 %v1142_v36, %v933_v35 }
  0x30   :  { %636 = vmatpush.bf16.msrb.mxu2 %v1022_v13  ;;  %v925_v45 = vld [vmem:[#allocation9 + $0x80] sm:$0xf]  ;;  %v1061_v46 = vld [vmem:[#allocation9 + $0x190] sm:$0xf]  ;;  %v1174_v47 = vld [vmem:[#allocation9 + $0x194] sm:$0xf0]  ;;  %v998_v53 = vor.u32 %v1158_v43, %v997_v42  ;;  %v862_v54 = vor.u32 %v1124_v41, %v861_v38 }
  0x31   :  { %649 = vmatpush.bf16.msrb.mxu3 %v1086_v15  ;;  %v1140_v48 = vld [vmem:[#allocation9 + $0x84] sm:$0xf0]  ;;  %v1137_v49 = vld [vmem:[#allocation9 + $0x74] sm:$0xf]  ;;  %v919_v50 = vld [vmem:[#allocation9 + $0x78] sm:$0xf0]  ;;  %v1062_v55 = vor.u32 %v1174_v47, %v1061_v46 }
  0x32   :  { %611 = vmatpush.bf16.msrb.mxu0 %v886_v14  ;;  %v1153_v51 = vld [vmem:[#allocation9 + $0xf4] sm:$0xf]  ;;  %v983_v52 = vld [vmem:[#allocation9 + $0xf8] sm:$0xf0]  ;;  %v989_v56 = vld [vmem:[#allocation9 + $0x100] sm:$0xf]  ;;  %v926_v58 = vor.u32 %v1140_v48, %v925_v45  ;;  %v922_v59 = vor.u32 %v1137_v49, %v919_v50 }
  0x33   :  { %624 = vmatpush.bf16.msrb.mxu1 %v950_v19  ;;  %v1156_v57 = vld [vmem:[#allocation9 + $0x104] sm:$0xf0]  ;;  %v1053_v60 = vld [vmem:[#allocation9 + $0x180] sm:$0xf]  ;;  %v986_v62 = vor.u32 %v1153_v51, %v983_v52  ;;  %v1135_v63 = vld [vmem:[#allocation9 + $0x64] sm:$0xf] }
  0x34   :  { %637 = vmatpush.bf16.msrb.mxu2 %v1014_v25  ;;  %v1172_v61 = vld [vmem:[#allocation9 + $0x184] sm:$0xf0]  ;;  %v911_v0 = vld [vmem:[#allocation9 + $0x68] sm:$0xf0]  ;;  %v1151_v1 = vld [vmem:[#allocation9 + $0xe4] sm:$0xf]  ;;  %v990_v3 = vor.u32 %v1156_v57, %v989_v56 }
  0x35   :  { %650 = vmatpush.bf16.msrb.mxu3 %v1078_v27  ;;  %v975_v2 = vld [vmem:[#allocation9 + $0xe8] sm:$0xf0]  ;;  %v1054_v4 = vor.u32 %v1172_v61, %v1053_v60  ;;  %v914_v5 = vor.u32 %v1135_v63, %v911_v0  ;;  %v1169_v7 = vld [vmem:[#allocation9 + $0x174] sm:$0xf]  ;;  %v1047_v8 = vld [vmem:[#allocation9 + $0x178] sm:$0xf0] }
  0x36   :  { %612 = vmatpush.bf16.msrb.mxu0 %v878_v26  ;;  %v978_v6 = vor.u32 %v1151_v1, %v975_v2  ;;  %v1185_v9 = vld [vmem:[#allocation9 + $0x1f4] sm:$0xf]  ;;  %v1050_v10 = vor.u32 %v1169_v7, %v1047_v8  ;;  %v1111_v11 = vld [vmem:[#allocation9 + $0x1f8] sm:$0xf0]  ;;  %v1167_v19 = vld [vmem:[#allocation9 + $0x164] sm:$0xf] }
  0x37   :  { %625 = vmatpush.bf16.msrb.mxu1 %v942_v31  ;;  %v1114_v12 = vor.u32 %v1185_v9, %v1111_v11  ;;  %v1133_v13 = vld [vmem:[#allocation9 + $0x54] sm:$0xf]  ;;  %v903_v14 = vld [vmem:[#allocation9 + $0x58] sm:$0xf0]  ;;  %v1039_v20 = vld [vmem:[#allocation9 + $0x168] sm:$0xf0] }
  0x38   :  { %638 = vmatpush.bf16.msrb.mxu2 %v1006_v37  ;;  %v906_v15 = vor.u32 %v1133_v13, %v903_v14  ;;  %v1149_v16 = vld [vmem:[#allocation9 + $0xd4] sm:$0xf]  ;;  %v967_v17 = vld [vmem:[#allocation9 + $0xd8] sm:$0xf0]  ;;  %v1183_v21 = vld [vmem:[#allocation9 + $0x1e4] sm:$0xf]  ;;  %v1042_v22 = vor.u32 %v1167_v19, %v1039_v20 }
  0x39   :  { %651 = vmatpush.bf16.msrb.mxu3 %v1070_v40  ;;  %v970_v18 = vor.u32 %v1149_v16, %v967_v17  ;;  %v1103_v23 = vld [vmem:[#allocation9 + $0x1e8] sm:$0xf0]  ;;  %v1131_v25 = vld [vmem:[#allocation9 + $0x44] sm:$0xf]  ;;  %v1165_v31 = vld [vmem:[#allocation9 + $0x154] sm:$0xf] }
  0x3a   :  { %613 = vmatpush.bf16.msrb.mxu0 %v870_v39  ;;  %v1106_v24 = vor.u32 %v1183_v21, %v1103_v23  ;;  %v895_v26 = vld [vmem:[#allocation9 + $0x48] sm:$0xf0]  ;;  %v1147_v27 = vld [vmem:[#allocation9 + $0xc4] sm:$0xf]  ;;  %v1031_v32 = vld [vmem:[#allocation9 + $0x158] sm:$0xf0] }
  0x3b   :  { %626 = vmatpush.bf16.msrb.mxu1 %v934_v44  ;;  %v898_v28 = vor.u32 %v1131_v25, %v895_v26  ;;  %v959_v29 = vld [vmem:[#allocation9 + $0xc8] sm:$0xf0]  ;;  %v1034_v33 = vor.u32 %v1165_v31, %v1031_v32  ;;  %v1181_v34 = vld [vmem:[#allocation9 + $0x1d4] sm:$0xf]  ;;  %v1095_v35 = vld [vmem:[#allocation9 + $0x1d8] sm:$0xf0] }
  0x3c   :  { %639 = vmatpush.bf16.msrb.mxu2 %v998_v53  ;;  %v962_v30 = vor.u32 %v1147_v27, %v959_v29  ;;  %v1098_v36 = vor.u32 %v1181_v34, %v1095_v35  ;;  %v1129_v37 = vld [vmem:[#allocation9 + $0x34] sm:$0xf]  ;;  %v887_v38 = vld [vmem:[#allocation9 + $0x38] sm:$0xf0]  ;;  %v1163_v43 = vld [vmem:[#allocation9 + $0x144] sm:$0xf] }
  0x3d   :  { %652 = vmatpush.bf16.msrb.mxu3 %v1062_v55  ;;  %v1145_v39 = vld [vmem:[#allocation9 + $0xb4] sm:$0xf]  ;;  %v890_v40 = vor.u32 %v1129_v37, %v887_v38  ;;  %v951_v41 = vld [vmem:[#allocation9 + $0xb8] sm:$0xf0]  ;;  %v1023_v44 = vld [vmem:[#allocation9 + $0x148] sm:$0xf0] }
  0x3e   :  { %614 = vmatpush.bf16.msrb.mxu0 %v862_v54  ;;  %v954_v42 = vor.u32 %v1145_v39, %v951_v41  ;;  %v1179_v45 = vld [vmem:[#allocation9 + $0x1c4] sm:$0xf]  ;;  %v1026_v46 = vor.u32 %v1163_v43, %v1023_v44  ;;  %v1087_v47 = vld [vmem:[#allocation9 + $0x1c8] sm:$0xf0]  ;;  %v1161_v55 = vld [vmem:[#allocation9 + $0x134] sm:$0xf] }
  0x3f   :  { %627 = vmatpush.bf16.msrb.mxu1 %v926_v58  ;;  %v1090_v48 = vor.u32 %v1179_v45, %v1087_v47  ;;  %v1127_v49 = vld [vmem:[#allocation9 + $0x24] sm:$0xf]  ;;  %v879_v50 = vld [vmem:[#allocation9 + $0x28] sm:$0xf0]  ;;  %v1015_v56 = vld [vmem:[#allocation9 + $0x138] sm:$0xf0] }
  0x40   :  { %640 = vmatpush.bf16.msrb.mxu2 %v990_v3  ;;  %v1143_v51 = vld [vmem:[#allocation9 + $0xa4] sm:$0xf]  ;;  %v882_v52 = vor.u32 %v1127_v49, %v879_v50  ;;  %v943_v53 = vld [vmem:[#allocation9 + $0xa8] sm:$0xf0]  ;;  %v1177_v57 = vld [vmem:[#allocation9 + $0x1b4] sm:$0xf]  ;;  %v1018_v58 = vor.u32 %v1161_v55, %v1015_v56 }
  0x41   :  { %653 = vmatpush.bf16.msrb.mxu3 %v1054_v4  ;;  %v946_v54 = vor.u32 %v1143_v51, %v943_v53  ;;  %v1125_v61 = vld [vmem:[#allocation9 + $0x14] sm:$0xf]  ;;  %v935_v1 = vld [vmem:[#allocation9 + $0x98] sm:$0xf0]  ;;  %v1159_v2 = vld [vmem:[#allocation9 + $0x124] sm:$0xf] }
  0x42   :  { %659 = vmatpush.bf16.msra.mxu0 %v922_v59  ;;  %v1079_v59 = vld [vmem:[#allocation9 + $0x1b8] sm:$0xf0]  ;;  %v1141_v63 = vld [vmem:[#allocation9 + $0x94] sm:$0xf]  ;;  %v1007_v3 = vld [vmem:[#allocation9 + $0x128] sm:$0xf0] }
  0x43   :  { %672 = vmatpush.bf16.msra.mxu1 %v986_v62  ;;  %v1082_v60 = vor.u32 %v1177_v57, %v1079_v59  ;;  %v871_v62 = vld [vmem:[#allocation9 + $0x18] sm:$0xf0]  ;;  %v938_v4 = vor.u32 %v1141_v63, %v935_v1  ;;  %v1071_v7 = vld [vmem:[#allocation9 + $0x1a8] sm:$0xf0]  ;;  %v1123_v8 = vld [vmem:[#allocation9 + $0x4] sm:$0xf] }
  0x44   :  { %685 = vmatpush.bf16.msra.mxu2 %v1050_v10  ;;  %v874_v0 = vor.u32 %v1125_v61, %v871_v62  ;;  %v863_v10 = vld [vmem:[#allocation9 + $0x8] sm:$0xf0]  ;;  %v1139_v11 = vld [vmem:[#allocation9 + $0x84] sm:$0xf]  ;;  %v999_v16 = vld [vmem:[#allocation9 + $0x118] sm:$0xf0] }
  0x45   :  { %698 = vmatpush.bf16.msra.mxu3 %v1114_v12  ;;  %v927_v12 = vld [vmem:[#allocation9 + $0x88] sm:$0xf0]  ;;  %v866_v13 = vor.u32 %v1123_v8, %v863_v10  ;;  %v1173_v17 = vld [vmem:[#allocation9 + $0x194] sm:$0xf]  ;;  %v1063_v19 = vld [vmem:[#allocation9 + $0x198] sm:$0xf0] }
  0x46   :  { %660 = vmatpush.bf16.msra.mxu0 %v914_v5  ;;  %v1010_v5 = vor.u32 %v1159_v2, %v1007_v3  ;;  %v930_v14 = vor.u32 %v1139_v11, %v927_v12  ;;  %v1066_v20 = vor.u32 %v1173_v17, %v1063_v19  ;;  %v99_v21 = vld [vmem:[#allocation8] sm:$0xf]  ;;  %v991_v23 = vld [vmem:[#allocation9 + $0x108] sm:$0xf0]  ;;  %v281_v59 = vld [vmem:[%s1425_s4] sm:$0x3] }
  0x47   :  { %673 = vmatpush.bf16.msra.mxu1 %v978_v6  ;;  %v1175_v6 = vld [vmem:[#allocation9 + $0x1a4] sm:$0xf]  ;;  %v1055_v26 = vld [vmem:[#allocation9 + $0x188] sm:$0xf0]  ;;  %v102_v29 = vperm.slane %v99_v21, 1  ;;  %v104_v38 = vperm.slane %v99_v21, 3 }
  0x48   :  { %686 = vmatpush.bf16.msra.mxu2 %v1042_v22  ;;  %v1074_v9 = vor.u32 %v1175_v6, %v1071_v7  ;;  %v1155_v22 = vld [vmem:[#allocation9 + $0x104] sm:$0xf]  ;;  %v283_v61 = vperm.slane %v281_v59, 0  ;;  %v715_v17 = vld [vmem:[%s1426_s5] sm:$0x3]  ;;  %s1336_s5 = smov [#allocation11]  }
  0x49   :  { %699 = vmatpush.bf16.msra.mxu3 %v1106_v24  ;;  %v1171_v24 = vld [vmem:[#allocation9 + $0x184] sm:$0xf]  ;;  %v994_v25 = vor.u32 %v1155_v22, %v991_v23  ;;  %v718_v22 = vperm.slane %v715_v17, 1  ;;  %s809_s25 = sshll.u32 %s1336_s5, 4  ;;  %vm802_vm2 = vcmask 57344   ;;  %s810_s25 = int_to_ptr.vmem [resolvable:$true] %s809_s25 }
  0x4a   :  { %661 = vmatpush.bf16.msra.mxu0 %v906_v15  ;;  %v1157_v15 = vld [vmem:[#allocation9 + $0x114] sm:$0xf]  ;;  %v1058_v27 = vor.u32 %v1171_v24, %v1055_v26 }
  0x4b   :  { %674 = vmatpush.bf16.msra.mxu1 %v970_v18  ;;  %v1002_v18 = vor.u32 %v1157_v15, %v999_v16 }
  0x4c   :  { %687 = vmatpush.bf16.msra.mxu2 %v1034_v33 }
  0x4d   :  { %700 = vmatpush.bf16.msra.mxu3 %v1098_v36  ;;  %v103_v36 = vperm.slane %v99_v21, 2 }
  0x4e   :  { %662 = vmatpush.bf16.msra.mxu0 %v898_v28  ;;  %v101_v28 = vperm.slane %v99_v21, 0  ;;  %v717_v21 = vperm.slane %v715_v17, 0 }
  0x4f   :  { %675 = vmatpush.bf16.msra.mxu1 %v962_v30 }
  0x50   :  { %688 = vmatpush.bf16.msra.mxu2 %v1026_v46 }
  0x51   :  { %701 = vmatpush.bf16.msra.mxu3 %v1090_v48 }
  0x52   :  { %663 = vmatpush.bf16.msra.mxu0 %v890_v40 }
  0x53   :  { %676 = vmatpush.bf16.msra.mxu1 %v954_v42 }
  0x54   :  { %689 = vmatpush.bf16.msra.mxu2 %v1018_v58 }
  0x55   :  { %702 = vmatpush.bf16.msra.mxu3 %v1082_v60 }
  0x56   :  { %664 = vmatpush.bf16.msra.mxu0 %v882_v52 }
  0x57   :  { %677 = vmatpush.bf16.msra.mxu1 %v946_v54 }
  0x58   :  { %690 = vmatpush.bf16.msra.mxu2 %v1010_v5 }
  0x59   :  { %703 = vmatpush.bf16.msra.mxu3 %v1074_v9 }
  0x5a   :  { %665 = vmatpush.bf16.msra.mxu0 %v874_v0 }
  0x5b   :  { %678 = vmatpush.bf16.msra.mxu1 %v938_v4  ;;  %v284_v4 = vperm.slane %v281_v59, 1 }
  0x5c   :  { %691 = vmatpush.bf16.msra.mxu2 %v1002_v18 }
  0x5d   :  { %704 = vmatpush.bf16.msra.mxu3 %v1066_v20 }
  0x5e   :  { %666 = vmatpush.bf16.msra.mxu0 %v866_v13 }
  0x5f   :  { %679 = vmatpush.bf16.msra.mxu1 %v930_v14 }
  0x60   :  { %692 = vmatpush.bf16.msra.mxu2 %v994_v25 }
  0x61   :  { %705 = vmatpush.bf16.msra.mxu3 %v1058_v27 }
  0x9e   :  { %v162_v30 = vpop.f32.mrf.mxu0 }
  0x9f   :  { %v163_v31 = vadd.f32 %v162_v30, %v101_v28  ;;  %v175_v32 = vpop.f32.mrf.mxu1 }
  0xa0   :  { %v176_v33 = vadd.f32 %v175_v32, %v102_v29 }
  0xa1   :  { %v205_v34 = vmul.f32 0.2, %v163_v31 }
  0xa2   :  { %v206_v35 = vmul.f32 0.2, %v176_v33 }
  0xa3   :  { %v209_v37 = vmax.f32 %v163_v31, %v205_v34 }
  0xa4   :  { %v210_v39 = vmax.f32 %v176_v33, %v206_v35 }
  0xa5   :  { %v213_v40 = vpack.c.bf16 %v209_v37, %v209_v37 }
  0xa6   :  { %v188_v41 = vpop.f32.mrf.mxu2  ;;  %v214_v42 = vpack.c.bf16 %v210_v39, %v210_v39  ;;  %v164_v45 = vpop.f32.mrf.mxu0 }
  0xa7   :  { %v189_v43 = vadd.f32 %v188_v41, %v103_v36  ;;  %v201_v44 = vpop.f32.mrf.mxu3  ;;  %615 = vmatmul.bf16.vlgmr.msrb.gmra.mxu0 %v213_v40  ;;  %v177_v47 = vpop.f32.mrf.mxu1 }
  0xa8   :  { %v202_v46 = vadd.f32 %v201_v44, %v104_v38  ;;  %628 = vmatmul.bf16.vlgmr.msrb.gmra.mxu1 %v214_v42 }
  0xa9   :  { %v207_v48 = vmul.f32 0.2, %v189_v43 }
  0xaa   :  { %v208_v49 = vmul.f32 0.2, %v202_v46 }
  0xab   :  { %v211_v50 = vmax.f32 %v189_v43, %v207_v48  ;;  %v1335_v43 = vmov 0  }
  0xac   :  { %v212_v51 = vmax.f32 %v202_v46, %v208_v49  ;;  %v794_v46 = vld [vmem:[#allocation2] sm:$0x1] }
  0xad   :  { %v215_v52 = vpack.c.bf16 %v211_v50, %v211_v50 }
  0xae   :  { %v216_v53 = vpack.c.bf16 %v212_v51, %v212_v51  ;;  %v190_v54 = vpop.f32.mrf.mxu2 }
  0xaf   :  { %v203_v55 = vpop.f32.mrf.mxu3  ;;  %641 = vmatmul.bf16.vlgmr.msrb.gmra.mxu2 %v215_v52 }
  0xb0   :  { %654 = vmatmul.bf16.vlgmr.msrb.gmra.mxu3 %v216_v53 }
  0xb7   :  { %667 = vmatmul.bf16.vlgmr.msra.gmra.mxu0 %v213_v40 }
  0xb8   :  { %680 = vmatmul.bf16.vlgmr.msra.gmra.mxu1 %v214_v42 }
  0xbf   :  { %693 = vmatmul.bf16.vlgmr.msra.gmra.mxu2 %v215_v52 }
  0xc0   :  { %706 = vmatmul.bf16.vlgmr.msra.gmra.mxu3 %v216_v53 }
 0x124   :  { %v616_v56 = vpop.f32.mrf.mxu0 }
 0x125   :  { %v629_v57 = vpop.f32.mrf.mxu1  ;;  %v617_v0 = vadd.f32 %v616_v56, %v283_v61 }
 0x127   :  { %v630_v3 = vadd.f32 %v629_v57, %v617_v0 }
 0x12c   :  { %v618_v58 = vpop.f32.mrf.mxu0 }
 0x12d   :  { %v631_v60 = vpop.f32.mrf.mxu1 }
 0x132   :  { %v642_v62 = vpop.f32.mrf.mxu2 }
 0x133   :  { %v655_v63 = vpop.f32.mrf.mxu3  ;;  %v643_v6 = vadd.f32 %v642_v62, %v630_v3 }
 0x134   :  { %v668_v1 = vpop.f32.mrf.mxu0 }
 0x135   :  { %v681_v2 = vpop.f32.mrf.mxu1  ;;  %v669_v8 = vadd.f32 %v668_v1, %v284_v4  ;;  %v656_v11 = vadd.f32 %v655_v63, %v643_v6 }
 0x137   :  { %v682_v12 = vadd.f32 %v681_v2, %v669_v8  ;;  %v711_v14 = vmul.f32 0.2, %v656_v11 }
 0x139   :  { %v713_v19 = vmax.f32 %v656_v11, %v711_v14 }
 0x13a   :  { %v644_v5 = vpop.f32.mrf.mxu2 }
 0x13b   :  { %v657_v7 = vpop.f32.mrf.mxu3  ;;  %v721_v26 = vmul.f32 %v717_v21, %v713_v19 }
 0x13c   :  { %v670_v9 = vpop.f32.mrf.mxu0 }
 0x13d   :  { %v683_v10 = vpop.f32.mrf.mxu1 }
 0x142   :  { %v694_v13 = vpop.f32.mrf.mxu2 }
 0x143   :  { %v695_v15 = vadd.f32 %v694_v13, %v682_v12  ;;  %v707_v16 = vpop.f32.mrf.mxu3 }
 0x145   :  { %v708_v18 = vadd.f32 %v707_v16, %v695_v15 }
 0x147   :  { %v712_v20 = vmul.f32 0.2, %v708_v18 }
 0x149   :  { %v714_v23 = vmax.f32 %v708_v18, %v712_v20 }
 0x14a   :  { %v696_v24 = vpop.f32.mrf.mxu2 }
 0x14b   :  { %v709_v25 = vpop.f32.mrf.mxu3  ;;  %v722_v27 = vmul.f32 %v718_v22, %v714_v23 }
 0x14d   :  { %v723_v28 = vadd.f32 %v722_v27, %v721_v26 }
 0x14f   :  { %724 = vxpose.xlu0.b32.start.end [1/1] (short) %v723_v28, 128 }
 0x1b6   :  { %1198 = vset.pattern.permute.xlu0 %v1335_v43 }
 0x1f3   :  { %v740_v29 = vpop.trf.xlu0 }
 0x1f4   :  { %v757_v30 = vsel %vm756_vm1, %v740_v29, 0.0 }
 0x1fb   :  { %v741_v31 = vpop.trf.xlu0 }
 0x1fc   :  { %v758_v32 = vsel %vm756_vm1, %v741_v31, 0.0 }
 0x1fd   :  { %v759_v33 = vadd.f32 %v758_v32, %v757_v30 }
 0x203   :  { %v742_v34 = vpop.trf.xlu0 }
 0x204   :  { %v760_v35 = vsel %vm756_vm1, %v742_v34, 0.0 }
 0x205   :  { %v761_v36 = vadd.f32 %v760_v35, %v759_v33 }
 0x20b   :  { %v743_v37 = vpop.trf.xlu0 }
 0x20c   :  { %v762_v38 = vsel %vm756_vm1, %v743_v37, 0.0 }
 0x20d   :  { %v763_v39 = vadd.f32 %v762_v38, %v761_v36 }
 0x213   :  { %v744_v40 = vpop.trf.xlu0 }
 0x214   :  { %v764_v41 = vsel %vm756_vm1, %v744_v40, 0.0 }
 0x215   :  { %v765_v42 = vadd.f32 %v764_v41, %v763_v39 }
 0x21b   :  { %v745_v44 = vpop.trf.xlu0 }
 0x21c   :  { %v766_v53 = vsel %vm756_vm1, %v745_v44, 0.0 }
 0x21d   :  { %v767_v55 = vadd.f32 %v766_v53, %v765_v42 }
 0x223   :  { %v746_v45 = vpop.trf.xlu0 }
 0x224   :  { %v768_v56 = vsel %vm756_vm1, %v746_v45, 0.0 }
 0x225   :  { %v769_v57 = vadd.f32 %v768_v56, %v767_v55 }
 0x22b   :  { %v747_v47 = vpop.trf.xlu0 }
 0x22c   :  { %v770_v58 = vsel %vm756_vm1, %v747_v47, 0.0 }
 0x22d   :  { %v771_v60 = vadd.f32 %v770_v58, %v769_v57 }
 0x233   :  { %v748_v48 = vpop.trf.xlu0 }
 0x234   :  { %v772_v59 = vsel %vm756_vm1, %v748_v48, 0.0 }
 0x235   :  { %797 = vperm.xlu0 %1198, %v794_v46   ;;  %v773_v63 = vadd.f32 %v772_v59, %v771_v60 }
 0x23b   :  { %v749_v49 = vpop.trf.xlu0 }
 0x23c   :  { %v774_v62 = vsel %vm756_vm1, %v749_v49, 0.0 }
 0x23d   :  { %v775_v1 = vadd.f32 %v774_v62, %v773_v63 }
 0x243   :  { %v750_v50 = vpop.trf.xlu0 }
 0x244   :  { %v776_v0 = vsel %vm756_vm1, %v750_v50, 0.0 }
 0x245   :  { %v777_v3 = vadd.f32 %v776_v0, %v775_v1 }
 0x24b   :  { %v751_v51 = vpop.trf.xlu0 }
 0x24c   :  { %v778_v2 = vsel %vm756_vm1, %v751_v51, 0.0 }
 0x24d   :  { %v779_v5 = vadd.f32 %v778_v2, %v777_v3 }
 0x253   :  { %v752_v52 = vpop.trf.xlu0 }
 0x254   :  { %v780_v4 = vsel %vm756_vm1, %v752_v52, 0.0 }
 0x255   :  { %v781_v7 = vadd.f32 %v780_v4, %v779_v5 }
 0x25b   :  { %v753_v54 = vpop.trf.xlu0 }
 0x25c   :  { %v782_v6 = vsel %vm756_vm1, %v753_v54, 0.0 }
 0x25d   :  { %v783_v10 = vadd.f32 %v782_v6, %v781_v7 }
 0x263   :  { %v754_v61 = vpop.trf.xlu0 }
 0x264   :  { %v784_v9 = vsel %vm756_vm1, %v754_v61, 0.0 }
 0x265   :  { %v785_v12 = vadd.f32 %v784_v9, %v783_v10 }
 0x26b   :  { %v755_v8 = vpop.trf.xlu0 }
 0x26c   :  { %v786_v11 = vsel %vm756_vm1, %v755_v8, 0.0 }
 0x26d   :  { %v787_v13 = vadd.f32 %v786_v11, %v785_v12 }
 0x26f   :  { %v788_v14 = vrot.slane %v787_v13, 4 }
 0x271   :  { %v789_v15 = vadd.f32 %v788_v14, %v787_v13 }
 0x273   :  { %v790_v16 = vrot.slane %v789_v15, 2 }
 0x275   :  { %v791_v17 = vadd.f32 %v790_v16, %v789_v15 }
 0x277   :  { %v792_v18 = vrot.slane %v791_v17, 1 }
 0x279   :  { %v793_v20 = vadd.f32 %v792_v18, %v791_v17 }
 0x2a7   :  { %v798_v19 = vpop.permute.xlu0 %797 }
 0x2a8   :  { %v800_v21 = vperm.slane %v798_v19, 0 }
 0x2aa   :  { %v801_v22 = vadd.f32 %v800_v21, %v793_v20 }
 0x2ac   :  { %803 = vst.msk [vmem:[#allocation11] sm:$0x1] %vm802_vm2, %v801_v22 }
 0x2ad   :  { %814 = dma.vmem_to_hbm [thread:$0]  %s810_s25, 16, %s812_s28, [#allocation5]  }
 0x2ae   :  { %1325 = dma.done.wait [#allocation5], 16  }
 0x2af   :  { %1326 = vsyncadd [#allocation5], 4294967280 }
 0x2b0   :  { %819 = vsyncpa [#allocation4], 1 }
 0x2b1   :  { %820 = vsyncpa [#allocation7], 1 }
 0x2b2   :  { %821 = vsyncpa [#allocation10], 1 }
 0x2b3   :  { %822 = vsyncpa [#allocation5], 1 }

</bundles_post_ra>
